<compile_context>
chip_gen: v7x
topology: tpu7x:2x2x1
jax: 0.10.0
libtpu: 0.0.40
codegen_flags: <defaults>
</compile_context>

<pallas_src>
import math
import functools

import jax
import jax.numpy as jnp
from jax.experimental import pallas as pl
from jax.experimental.pallas import tpu as pltpu


def _gaussian_taps(kernel_size: int, sigma: float) -> tuple:
    """1D taps whose outer product equals the module's normalized 2D kernel.

    Matches the PyTorch __init__ verbatim (note the non-standard
    exp(-((x - mean) / (2*std))**2) form). Computed in Python double precision,
    folded once into f32 immediates inside the kernel.
    """
    mean = (kernel_size - 1) / 2.0
    g = [
        (1.0 / (sigma * math.sqrt(2.0 * math.pi)))
        * math.exp(-(((i - mean) / (2.0 * sigma)) ** 2))
        for i in range(kernel_size)
    ]
    s = sum(g)
    return tuple(gi / s for gi in g)


def _smooth_kernel(x_ref, o_ref, *, taps, K: int, H: int, NCW: int):
    """Single-step body; batch and channels packed on the lane axis.

    x_ref: (H, N*C*W)   with x_packed[h, (n*C+c)*W + w] == x[n, c, h, w]
    o_ref: (H, N*C*W)   full-width slab; only rows < H_out and, within each
                        W-segment, columns w < W_out are valid (wrapper trims).

    Separable depthwise cross-correlation (== F.conv2d semantics, and the
    Gaussian kernel is symmetric): K lane rolls (W pass) + K sublane rolls
    (H pass), each a compile-time-scalar FMA on the VPU; rolls go through the
    XLU slot so they co-issue with the FMAs. f32 accumulation throughout.
    """
    xv = x_ref[...].astype(jnp.float32)  # load + cast exactly once

    # Horizontal (W) pass: circular lane roll.  roll(x, NCW-kj) gives
    # out[l] = x[(l+kj) mod NCW]; for every kept column (w < W_out) l+kj stays
    # inside the same channel's W-segment, so the wraparound only touches the
    # junk columns the wrapper discards.
    tmp = taps[0] * xv
    for kj in range(1, K):
        tmp = tmp + taps[kj] * pltpu.roll(xv, shift=(NCW - kj) % NCW, axis=1)

    # Vertical (H) pass: circular sublane roll.  Wrapped rows land at
    # h >= H_out and are discarded by the wrapper.
    out = taps[0] * tmp
    for ki in range(1, K):
        out = out + taps[ki] * pltpu.roll(tmp, shift=(H - ki) % H, axis=0)

    o_ref[...] = out.astype(o_ref.dtype)  # full-width, lane-dense store


def gaussian_smoothing(x: jnp.ndarray, kernel_size: int, sigma: float) -> jnp.ndarray:
    """x: (N, C, H, W) -> (N, C, H-K+1, W-K+1). Depthwise valid Gaussian conv."""
    N, C, H, W = x.shape
    K = kernel_size
    H_out, W_out = H - K + 1, W - K + 1
    NCW = N * C * W
    taps = _gaussian_taps(K, sigma)

    # Pack batch+channels along the lane axis: (N, C, H, W) -> (H, N*C*W).
    # allow_input_fusion lets XLA fuse this transpose into the kernel's operand
    # fetch instead of materializing a separate HBM round trip.
    x_packed = jnp.transpose(x, (2, 0, 1, 3)).reshape(H, NCW)

    kern = functools.partial(_smooth_kernel, taps=taps, K=K, H=H, NCW=NCW)
    y = pl.pallas_call(
        kern,
        out_shape=jax.ShapeDtypeStruct((H, NCW), x.dtype),
        grid=(1,),
        in_specs=[pl.BlockSpec((H, NCW), lambda i: (0, 0))],
        out_specs=pl.BlockSpec((H, NCW), lambda i: (0, 0)),
        compiler_params=pltpu.CompilerParams(
            dimension_semantics=("arbitrary",),
            allow_input_fusion=[True],
        ),
    )(x_packed)

    # Single fused unpack: trim the K-1 junk rows / per-segment junk columns and
    # restore NCHW: (H, N*C*W) -> (N, C, H_out, W_out).
    return y.reshape(H, N, C, W)[:H_out, :, :, :W_out].transpose(1, 2, 0, 3)


# ---------------- reference (pure JAX, mirrors the PyTorch module exactly) ----------


def make_gaussian_weight(channels: int, kernel_size: int, sigma: float) -> jnp.ndarray:
    """Replicates the PyTorch __init__ weight construction exactly (dim=2)."""
    coords = jnp.arange(kernel_size, dtype=jnp.float32)
    mean = (kernel_size - 1) / 2.0
    g1 = (1.0 / (sigma * math.sqrt(2.0 * math.pi))) * jnp.exp(
        -((coords - mean) / (2.0 * sigma)) ** 2
    )
    k2 = g1[:, None] * g1[None, :]
    k2 = k2 / jnp.sum(k2)
    return jnp.broadcast_to(k2, (channels, kernel_size, kernel_size)).astype(jnp.float32)


def _reference(x: jnp.ndarray, weight: jnp.ndarray) -> jnp.ndarray:
    """Depthwise valid conv via lax.conv_general_dilated (== F.conv2d, groups=C)."""
    C = x.shape[1]
    K = weight.shape[-1]
    rhs = weight.reshape(C, 1, K, K)
    return jax.lax.conv_general_dilated(
        x, rhs, window_strides=(1, 1), padding="VALID",
        dimension_numbers=("NCHW", "OIHW", "NCHW"),
        feature_group_count=C,
    )


if __name__ == "__main__":
    # Module config (synthetic, deterministic): channels=4, kernel_size=3, sigma=1.0
    N, C, H, W = 2, 4, 16, 16
    K, SIGMA = 3, 1.0

    key = jax.random.PRNGKey(0)
    x = jax.random.normal(key, (N, C, H, W), dtype=jnp.float32)

    out = gaussian_smoothing(x, K, SIGMA)
    out = jax.block_until_ready(out)

    ref = _reference(x, make_gaussian_weight(C, K, SIGMA))
    assert out.shape == (N, C, H - K + 1, W - K + 1), out.shape
    assert jnp.allclose(out, ref, atol=1e-5, rtol=1e-5), "mismatch vs reference conv"

    print("KERNEL_OK")
</pallas_src>

<mosaic_0001>
module attributes {stable_mosaic.version = 11 : i64} {
  func.func @_smooth_kernel(%arg0: i32, %arg1: memref<16x128xf32, #tpu.memory_space<vmem>>, %arg2: memref<16x128xf32, #tpu.memory_space<vmem>>) attributes {dimension_semantics = [#tpu.dimension_semantics<arbitrary>], iteration_bounds = array<i64: 1>, scalar_prefetch = 0 : i64, scratch_operands = 0 : i64, tpu.core_type = #tpu.core_type<tc>, window_params = [{pipeline_mode = #tpu.pipeline_mode<synchronous>, transform_indices = @transform_0, window_bounds = array<i64: 16, 128>}, {pipeline_mode = #tpu.pipeline_mode<synchronous>, transform_indices = @transform_1, window_bounds = array<i64: 16, 128>}]} {
    %c0 = arith.constant 0 : index
    %c0_0 = arith.constant 0 : index
    %0 = vector.load %arg1[%c0, %c0_0] : memref<16x128xf32, #tpu.memory_space<vmem>>, vector<16x128xf32>
    %cst = arith.constant 0.304504335 : f32
    %1 = vector.broadcast %cst : f32 to vector<16x128xf32>
    %2 = arith.mulf %1, %0 : vector<16x128xf32>
    %c127_i32 = arith.constant 127 : i32
    %3 = tpu.dynamic_rotate %0 by %c127_i32 dim 1 : vector<16x128xf32>, i32 -> vector<16x128xf32>
    %cst_1 = arith.constant 0.3909913 : f32
    %4 = vector.broadcast %cst_1 : f32 to vector<16x128xf32>
    %5 = arith.mulf %4, %3 : vector<16x128xf32>
    %6 = arith.addf %2, %5 : vector<16x128xf32>
    %c126_i32 = arith.constant 126 : i32
    %7 = tpu.dynamic_rotate %0 by %c126_i32 dim 1 : vector<16x128xf32>, i32 -> vector<16x128xf32>
    %cst_2 = arith.constant 0.304504335 : f32
    %8 = vector.broadcast %cst_2 : f32 to vector<16x128xf32>
    %9 = arith.mulf %8, %7 : vector<16x128xf32>
    %10 = arith.addf %6, %9 : vector<16x128xf32>
    %cst_3 = arith.constant 0.304504335 : f32
    %11 = vector.broadcast %cst_3 : f32 to vector<16x128xf32>
    %12 = arith.mulf %11, %10 : vector<16x128xf32>
    %c15_i32 = arith.constant 15 : i32
    %13 = tpu.dynamic_rotate %10 by %c15_i32 dim 0 : vector<16x128xf32>, i32 -> vector<16x128xf32>
    %cst_4 = arith.constant 0.3909913 : f32
    %14 = vector.broadcast %cst_4 : f32 to vector<16x128xf32>
    %15 = arith.mulf %14, %13 : vector<16x128xf32>
    %16 = arith.addf %12, %15 : vector<16x128xf32>
    %c14_i32 = arith.constant 14 : i32
    %17 = tpu.dynamic_rotate %10 by %c14_i32 dim 0 : vector<16x128xf32>, i32 -> vector<16x128xf32>
    %cst_5 = arith.constant 0.304504335 : f32
    %18 = vector.broadcast %cst_5 : f32 to vector<16x128xf32>
    %19 = arith.mulf %18, %17 : vector<16x128xf32>
    %20 = arith.addf %16, %19 : vector<16x128xf32>
    %c0_6 = arith.constant 0 : index
    %c0_7 = arith.constant 0 : index
    %21 = vector.load %arg2[%c0_6, %c0_7] : memref<16x128xf32, #tpu.memory_space<vmem>>, vector<16x128xf32>
    tpu.vector_store %arg2[%c0_6, %c0_7], %20 {strides = array<i32>} : memref<16x128xf32, #tpu.memory_space<vmem>>, vector<16x128xf32>,
    return
  }
  func.func @transform_0(%arg0: i32) -> (i32, i32) {
    %c0_i32 = arith.constant 0 : i32
    %c0_i32_0 = arith.constant 0 : i32
    %c0_i32_1 = arith.constant 0 : i32
    return %c0_i32, %c0_i32_0 : i32, i32
  }
  func.func @transform_1(%arg0: i32) -> (i32, i32) {
    %c0_i32 = arith.constant 0 : i32
    %c0_i32_0 = arith.constant 0 : i32
    %c0_i32_1 = arith.constant 0 : i32
    return %c0_i32, %c0_i32_0 : i32, i32
  }
}

</mosaic_0001>

<bundles_post_ra>
// kernel: tpu_custom_call.1
= control target key start
LH: loop header
LB: loop body
LE: loop exit
PB: predicated region body
PF: predicated region fallthrough
CT: control target
= control target key end

     0   :  { %6 = vsyncpa [#allocation3], 0  ;;  %s184_s0 = inlined_call_operand.hbm [shape: f32[16,128], index: 0, kind: input, shape index: {}]   ;;  %s185_s1 = inlined_call_operand.hbm [shape: f32[16,128], index: 1, kind: output, shape index: {}]  }
   0x1   :  { %7 = vsyncpa [#allocation4], 0  ;;  %s138_s6 = smov [#allocation2]   ;;  %s90_s10 = scalar_lea.hbm %s184_s0, 256 }
   0x2   :  { %s13_s7 = sshll.u32 %s138_s6, 4  ;;  %p91_p0 = scmp.ne.s32.totalorder %s184_s0, %s90_s10  ;;  %s14_s7 = int_to_ptr.vmem [resolvable:$true] %s13_s7 }
   0x3   :  { %p94_p1 = scmp.lt.u32.totalorder %s90_s10, %s184_s0 }
   0x5   :  { %p96_p2 = pnand %p94_p1, %p91_p0 }
   0x7   :  { %99 = shalt.err (!%p96_p2)
}
   0x8   :  { %s100_s15 = scalar_lea.vmem %s14_s7, 256  ;;  %p105_p4 = scmp.lt.s32.totalorder %s14_s7, %s14_s7 }
   0x9   :  { %p101_p3 = scmp.ne.s32.totalorder %s14_s7, %s100_s15  ;;  %p106_p5 = scmp.lt.s32.totalorder %s100_s15, %s100_s15 }
   0xb   :  { %p107_p6 = por %p106_p5, %p105_p4 }
   0xd   :  { %p108_p7 = pnand %p107_p6, %p101_p3 }
   0xf   :  { %111 = shalt.err (!%p108_p7)
}
  0x10   :  { %s139_s16 = smov 128   ;;  %s140_s17 = smov 8  }
  0x11   :  { %19 = dma.hbm_to_vmem [thread:$0]  %s184_s0, 256, %s14_s7, [#allocation3], %s139_s16, %s139_s16, %s140_s17  }
  0x12   :  { %134 = dma.done.wait [#allocation3], 256  }
  0x13   :  { %135 = vsyncadd [#allocation3], 4294967040  ;;  %v23_v0 = vld [vmem:[#allocation2] sm:$0xff]  ;;  %s141_s20 = smov 127   ;;  %s142_s21 = smov 126   ;;  %v24_v1 = vld [vmem:[#allocation2 + $0x8] sm:$0xff]  ;;  %v47_v6 = vlaneseq }
  0x14   :  { %27 = vrot.lane.b32.xlu0 %v23_v0, %s141_s20  ;;  %35 = vrot.lane.b32.xlu1 %v23_v0, %s142_s21  ;;  %v25_v2 = vmul.f32 0.30450433, %v23_v0  ;;  %v26_v9 = vmul.f32 0.30450433, %v24_v1  ;;  %s143_s0 = smov [#allocation5]  }
  0x15   :  { %v48_v14 = vshrl.u32 %v47_v6, 7  ;;  %s72_s22 = sshll.u32 %s143_s0, 4  ;;  %s73_s22 = int_to_ptr.vmem [resolvable:$true] %s72_s22 }
  0x16   :  { %s112_s23 = scalar_lea.vmem %s73_s22, 256  ;;  %p117_p9 = scmp.lt.s32.totalorder %s73_s22, %s73_s22 }
  0x17   :  { %vm49_vm0 = vcmp.lt.s32.totalorder %v48_v14, 7  ;;  %vm58_vm1 = vcmp.lt.s32.totalorder %v48_v14, 6  ;;  %p113_p8 = scmp.ne.s32.totalorder %s73_s22, %s112_s23  ;;  %p118_p10 = scmp.lt.s32.totalorder %s112_s23, %s112_s23 }
  0x18   :  { %29 = vrot.lane.b32.xlu0 %v24_v1, %s141_s20  ;;  %37 = vrot.lane.b32.xlu1 %v24_v1, %s142_s21 }
  0x19   :  { %p119_p11 = por %p118_p10, %p117_p9 }
  0x1b   :  { %p120_p12 = pnand %p119_p11, %p113_p8 }
  0x86   :  { %v28_v3 = vpop.permute.xlu0 %27  ;;  %v36_v4 = vpop.permute.xlu1 %35 }
  0x87   :  { %v31_v5 = vmul.f32 0.3909913, %v28_v3  ;;  %v39_v8 = vmul.f32 0.30450433, %v36_v4 }
  0x89   :  { %v33_v7 = vadd.f32 %v31_v5, %v25_v2 }
  0x8a   :  { %v30_v10 = vpop.permute.xlu0 %29  ;;  %v38_v11 = vpop.permute.xlu1 %37 }
  0x8b   :  { %v32_v12 = vmul.f32 0.3909913, %v30_v10  ;;  %v40_v13 = vmul.f32 0.30450433, %v38_v11  ;;  %v41_v15 = vadd.f32 %v39_v8, %v33_v7 }
  0x8d   :  { %v34_v16 = vadd.f32 %v32_v12, %v26_v9  ;;  %v45_v18 = vrot.slane %v41_v15, 1  ;;  %v56_v19 = vrot.slane %v41_v15, 2  ;;  %v43_v22 = vmul.f32 0.30450433, %v41_v15 }
  0x8f   :  { %v42_v17 = vadd.f32 %v40_v13, %v34_v16 }
  0x91   :  { %v46_v20 = vrot.slane %v42_v17, 1  ;;  %v57_v21 = vrot.slane %v42_v17, 2  ;;  %v44_v27 = vmul.f32 0.30450433, %v42_v17 }
  0x93   :  { %v50_v23 = vsel %vm49_vm0, %v45_v18, %v46_v20  ;;  %v51_v24 = vsel %vm49_vm0, %v46_v20, %v45_v18  ;;  %v59_v25 = vsel %vm58_vm1, %v56_v19, %v57_v21  ;;  %v60_v26 = vsel %vm58_vm1, %v57_v21, %v56_v19 }
  0x94   :  { %v52_v28 = vmul.f32 0.3909913, %v50_v23  ;;  %v53_v29 = vmul.f32 0.3909913, %v51_v24  ;;  %v61_v32 = vmul.f32 0.30450433, %v59_v25 }
  0x95   :  { %v62_v33 = vmul.f32 0.30450433, %v60_v26 }
  0x96   :  { %v54_v30 = vadd.f32 %v52_v28, %v43_v22  ;;  %v55_v31 = vadd.f32 %v53_v29, %v44_v27 }
  0x98   :  { %v63_v34 = vadd.f32 %v61_v32, %v54_v30  ;;  %v64_v35 = vadd.f32 %v62_v33, %v55_v31 }
  0x9a   :  { %65 = vst [vmem:[#allocation5] sm:$0xff] %v63_v34  ;;  %66 = vst [vmem:[#allocation5 + $0x8] sm:$0xff] %v64_v35 }
  0x9b   :  { %123 = shalt.err (!%p120_p12)
}
  0x9c   :  { %s124_s26 = scalar_lea.hbm %s185_s1, 256 }
  0x9d   :  { %p125_p13 = scmp.ne.s32.totalorder %s185_s1, %s124_s26  ;;  %p128_p0 = scmp.lt.u32.totalorder %s124_s26, %s185_s1 }
  0x9f   :  { %p130_p1 = pnand %p128_p0, %p125_p13 }
  0xa1   :  { %133 = shalt.err (!%p130_p1)
}
  0xa2   :  { %78 = dma.vmem_to_hbm [thread:$0]  %s73_s22, 256, %s185_s1, [#allocation4], %s139_s16, %s139_s16, %s140_s17  }
  0xa3   :  { %136 = dma.done.wait [#allocation4], 256  }
  0xa4   :  { %137 = vsyncadd [#allocation4], 4294967040 }
  0xa5   :  { %82 = vsyncpa [#allocation3], 1 }
  0xa6   :  { %83 = vsyncpa [#allocation4], 1 }

</bundles_post_ra>
